<compile_context>
chip_gen: v7x
topology: tpu7x:2x2x1
jax: 0.10.0
libtpu: 0.0.40
codegen_flags: <defaults>
</compile_context>

<pallas_src>
import jax
import jax.numpy as jnp
from jax.experimental import pallas as pl
from jax.experimental.pallas import tpu as pltpu


# ----------------------------------------------------------------------------
# Primary path: zero-copy alias kernel.
# ----------------------------------------------------------------------------
def _alias_noop_kernel(x_hbm_ref, o_hbm_ref):
    # The output buffer is aliased to the input (input_output_aliases={0: 0}),
    # so the data is already in place: intentionally no loads, stores or DMAs.
    del x_hbm_ref, o_hbm_ref


def unsqueeze0(x):
    """Equivalent of `x.unsqueeze(0)`: returns an array of shape (1, *x.shape)."""
    shape = tuple(x.shape)
    if x.ndim == 0 or x.size == 0:
        # Degenerate inputs: nothing for a kernel to do; metadata-only reshape.
        return jnp.reshape(x, (1,) + shape)

    out = pl.pallas_call(
        _alias_noop_kernel,
        out_shape=jax.ShapeDtypeStruct(shape, x.dtype),
        in_specs=[pl.BlockSpec(memory_space=pl.ANY)],   # raw HBM ref, no auto-DMA
        out_specs=pl.BlockSpec(memory_space=pl.ANY),
        input_output_aliases={0: 0},                    # output IS the input buffer
        compiler_params=pltpu.CompilerParams(has_side_effects=True),
    )(x)
    # Adding the leading unit dim on a contiguous array is metadata only.
    return jnp.reshape(out, (1,) + shape)


# ----------------------------------------------------------------------------
# Materializing variant: lane-dense streaming copy (kept for callers that need
# a fresh output buffer; incorporates the tiling feedback).
# ----------------------------------------------------------------------------
def _copy_kernel(x_ref, o_ref):
    o_ref[...] = x_ref[...]


def unsqueeze0_copy(x):
    """Like unsqueeze0, but materializes a fresh (1, *x.shape) buffer."""
    shape = tuple(x.shape)
    total = int(x.size)

    lanes = None
    if total > 0:
        for cand in (512, 256, 128):
            if total % cand == 0:
                lanes = cand
                break

    if lanes is None:
        # Non-lane-dense element counts: the zero-copy alias path has no layout
        # constraints, so use it instead of a whole-array single-block copy.
        return unsqueeze0(x)

    rows = total // lanes
    flat = x.reshape(rows, lanes)          # contiguous row-major view: free

    itemsize = int(x.dtype.itemsize)
    # dtype-aware sublane granularity: 8 (f32) / 16 (bf16) / 32 (int8, fp8).
    sublane = max(8, 32 // max(itemsize, 1))

    # 4 MiB tiles -> 16 MiB double-buffered in+out working set.
    tile_budget_bytes = 4 * 1024 * 1024
    tm = tile_budget_bytes // (lanes * itemsize)
    if tm >= rows:
        tm = rows                                   # full extent is always legal
    else:
        tm = max(sublane, (tm // sublane) * sublane)

    out = pl.pallas_call(
        _copy_kernel,
        out_shape=jax.ShapeDtypeStruct((rows, lanes), x.dtype),
        grid=(pl.cdiv(rows, tm),),
        in_specs=[pl.BlockSpec((tm, lanes), lambda i: (i, 0))],
        out_specs=pl.BlockSpec((tm, lanes), lambda i: (i, 0)),
        compiler_params=pltpu.CompilerParams(
            dimension_semantics=("parallel",),      # lets v7x shard over both TCs
            vmem_limit_bytes=32 * 1024 * 1024,      # covers v5e's 16 MiB default
        ),
        cost_estimate=pl.CostEstimate(
            flops=0, transcendentals=0, bytes_accessed=2 * total * itemsize),
    )(flat)

    # Contiguous reshape back + new leading unit dim: metadata only.
    return out.reshape((1,) + shape)


if __name__ == "__main__":
    key = jax.random.PRNGKey(0)
    k0, k1 = jax.random.split(key)

    # Primary (zero-copy alias) path.
    x = jax.random.normal(k0, (2, 4, 16, 16), dtype=jnp.float32)
    y = jax.block_until_ready(unsqueeze0(x))
    assert y.shape == (1, 2, 4, 16, 16), y.shape
    assert y.dtype == x.dtype
    assert jnp.array_equal(y, jnp.reshape(x, (1,) + x.shape)), "alias path mismatch"

    # Streaming-copy variant (f32, lane-dense).
    yc = jax.block_until_ready(unsqueeze0_copy(x))
    assert yc.shape == (1, 2, 4, 16, 16), yc.shape
    assert jnp.array_equal(yc, y), "copy path mismatch (f32)"

    # Streaming-copy variant (bf16 exercises the dtype-aware sublane tiling).
    xb = jax.random.normal(k1, (2, 4, 32, 32), dtype=jnp.bfloat16)
    yb = jax.block_until_ready(unsqueeze0_copy(xb))
    assert yb.shape == (1, 2, 4, 32, 32), yb.shape
    assert jnp.array_equal(yb, jnp.reshape(xb, (1,) + xb.shape)), "copy path mismatch (bf16)"

    # Non-lane-dense element count -> copy variant falls back to the alias path.
    xo = jax.random.normal(k0, (3, 5, 7), dtype=jnp.float32)
    yo = jax.block_until_ready(unsqueeze0_copy(xo))
    assert yo.shape == (1, 3, 5, 7), yo.shape
    assert jnp.array_equal(yo, jnp.reshape(xo, (1,) + xo.shape)), "fallback mismatch"

    print("KERNEL_OK")
</pallas_src>

<mosaic_0001>
module attributes {stable_mosaic.version = 11 : i64} {
  func.func @_alias_noop_kernel(%arg0: memref<2x4x16x16xf32, #tpu.memory_space<any>>, %arg1: memref<2x4x16x16xf32, #tpu.memory_space<any>>) attributes {dimension_semantics = [], scalar_prefetch = 0 : i64, scratch_operands = 0 : i64, tpu.core_type = #tpu.core_type<tc>} {
    return
  }
}

</mosaic_0001>

<bundles_post_ra>
// kernel: tpu_custom_call.1
= control target key start
LH: loop header
LB: loop body
LE: loop exit
PB: predicated region body
PF: predicated region fallthrough
CT: control target
= control target key end

     0   :  { %s16_s0 = inlined_call_operand.hbm [shape: f32[2,4,16,16], index: 0, kind: input, shape index: {}, may-alias: {0,1}]   ;;  %s17_s1 = inlined_call_operand.hbm [shape: f32[2,4,16,16], index: 1, kind: output, shape index: {}, may-alias: {0,1}]  }

</bundles_post_ra>
